<compile_context>
chip_gen: v7x
topology: tpu7x:2x2x1
jax: 0.10.0
libtpu: 0.0.40
codegen_flags: <defaults>
</compile_context>

<pallas_src>
import functools

import jax
import jax.numpy as jnp
from jax import lax
from jax.experimental import pallas as pl
from jax.experimental.pallas import tpu as pltpu


def _round_up(x, m):
    return ((x + m - 1) // m) * m


def _cdiv(a, b):
    return -(-a // b)


def _pick_row_tile(total_rows, target_rows):
    """Row tile that is a multiple of 8 (or the full extent) and gives an even
    number of grid steps when there is enough work, so the single "parallel"
    grid axis splits evenly across v7x's two TensorCores."""
    if total_rows <= 8:
        return total_rows
    pairs = max(1, _cdiv(total_rows, 2 * target_rows))
    tm = _round_up(_cdiv(total_rows, 2 * pairs), 8)
    return min(tm, total_rows)


def _inv_freq_dup(dim, base, base_rescale_factor, interpolation_factor):
    """__init__-equivalent buffer, duplicated to width `dim`, interp factor folded in."""
    base = base * base_rescale_factor ** (dim / (dim - 2))
    inv_freq = 1.0 / (base ** (jnp.arange(0, dim, 2, dtype=jnp.float32) / dim))
    # outer(t / c, inv_freq) == outer(t, inv_freq / c)  (~1 ulp reordering)
    inv_freq = inv_freq / jnp.float32(interpolation_factor)
    return jnp.concatenate([inv_freq, inv_freq])  # (dim,)


# ----------------------------------------------------------------------------- kernels


def _rope_iota_kernel(off_ref, invf_ref, out_ref, *, positions_per_row):
    # off_ref:  (1, L)   f32, lane l -> (l // dim)   (position offset inside a packed row)
    # invf_ref: (1, L)   f32, lane l -> inv_freq_dup[l % dim]
    # out_ref:  (TMR, L) f32, lane-dense packed output tile
    tmr = out_ref.shape[0]
    L = out_ref.shape[1]
    row = lax.broadcasted_iota(jnp.int32, (tmr, L), 0)
    base = pl.program_id(0) * tmr
    pos = ((base + row) * positions_per_row).astype(jnp.float32) + off_ref[...]
    out_ref[...] = pos * invf_ref[...]  # single full-width store


def _rope_outer_kernel(t_ref, invf_ref, out_ref):
    # t_ref:    (TM, 1)   positions (any int/float dtype)
    # invf_ref: (1, dim)  f32, pre-duplicated inv_freq
    # out_ref:  (TM, dim) f32
    out_ref[...] = t_ref[...].astype(jnp.float32) * invf_ref[...]


# ---------------------------------------------------------------------------- wrappers


def rotary_embedding_forward_from_seq_len(seq_len, dim, *, interpolation_factor=1.0,
                                          base=10000.0, base_rescale_factor=1.0,
                                          use_xpos=False):
    """RotaryEmbedding.forward_from_seq_len (t = arange(seq_len)), use_xpos=False path."""
    assert interpolation_factor >= 1.0
    assert dim % 2 == 0

    invf = _inv_freq_dup(dim, base, base_rescale_factor, interpolation_factor)

    # Lane-dense packing: R consecutive positions per 128-lane output row when possible.
    if dim < 128 and 128 % dim == 0 and seq_len % (128 // dim) == 0:
        R = 128 // dim
    else:
        R = 1  # fallback: plain (seq_len, dim) layout
    L = R * dim
    rows = seq_len // R

    invf_tiled = jnp.tile(invf, (R,)).reshape(1, L)
    lane_off = jnp.repeat(jnp.arange(R, dtype=jnp.float32), dim).reshape(1, L)

    tmr = _pick_row_tile(rows, 8192)
    grid = (_cdiv(rows, tmr),)

    cost = pl.CostEstimate(
        flops=2 * rows * L,
        transcendentals=0,
        bytes_accessed=rows * L * 4 + 2 * L * 4,
    )

    packed = pl.pallas_call(
        functools.partial(_rope_iota_kernel, positions_per_row=R),
        out_shape=jax.ShapeDtypeStruct((rows, L), jnp.float32),
        grid=grid,
        in_specs=[
            pl.BlockSpec((1, L), lambda i: (0, 0)),   # lane offsets, VMEM-resident
            pl.BlockSpec((1, L), lambda i: (0, 0)),   # tiled inv_freq, VMEM-resident
        ],
        out_specs=pl.BlockSpec((tmr, L), lambda i: (i, 0)),
        compiler_params=pltpu.CompilerParams(dimension_semantics=("parallel",)),
        cost_estimate=cost,
    )(lane_off, invf_tiled)

    freqs = packed.reshape(seq_len, dim)  # contiguous -> free reshape

    # TODO(synk): use_xpos branch of the reference forward() references undefined
    # `seq_len`/`rearrange` in the PyTorch source; only the scale=None path is built.
    return freqs, 1.0


def rotary_embedding_forward(t, dim, *, interpolation_factor=1.0, base=10000.0,
                             base_rescale_factor=1.0, use_xpos=False):
    """RotaryEmbedding.forward(t) for arbitrary position tensors (use_xpos=False path)."""
    assert interpolation_factor >= 1.0
    assert dim % 2 == 0

    invf = _inv_freq_dup(dim, base, base_rescale_factor, interpolation_factor)
    seq_len = t.shape[0]

    tm = _pick_row_tile(seq_len, 4096)
    grid = (_cdiv(seq_len, tm),)

    cost = pl.CostEstimate(
        flops=2 * seq_len * dim,
        transcendentals=0,
        bytes_accessed=seq_len * dim * 4 + seq_len * 4 + dim * 4,
    )

    freqs = pl.pallas_call(
        _rope_outer_kernel,
        out_shape=jax.ShapeDtypeStruct((seq_len, dim), jnp.float32),
        grid=grid,
        in_specs=[
            pl.BlockSpec((tm, 1), lambda i: (i, 0)),   # arbitrary positions
            pl.BlockSpec((1, dim), lambda i: (0, 0)),  # duplicated inv_freq, resident
        ],
        out_specs=pl.BlockSpec((tm, dim), lambda i: (i, 0)),
        compiler_params=pltpu.CompilerParams(dimension_semantics=("parallel",)),
        cost_estimate=cost,
    )(t.reshape(seq_len, 1), invf.reshape(1, dim))

    return freqs, 1.0


# -------------------------------------------------------------------------------- test


def _reference(t, dim, interpolation_factor=1.0, base=10000.0, base_rescale_factor=1.0):
    b = base * base_rescale_factor ** (dim / (dim - 2))
    inv_freq = 1.0 / (b ** (jnp.arange(0, dim, 2, dtype=jnp.float32) / dim))
    tf = t.astype(jnp.float32) / interpolation_factor
    f = jnp.einsum("i,j->ij", tf, inv_freq)
    return jnp.concatenate([f, f], axis=-1)


if __name__ == "__main__":
    key = jax.random.PRNGKey(0)

    # 1) forward_from_seq_len path (packed lane-dense output, no positions input)
    seq_len, dim = 8, 32
    f1, s1 = rotary_embedding_forward_from_seq_len(seq_len, dim)
    f1 = jax.block_until_ready(f1)
    r1 = _reference(jnp.arange(seq_len, dtype=jnp.int32), dim)
    assert f1.shape == (seq_len, dim)
    assert f1.dtype == jnp.float32
    assert s1 == 1.0
    assert jnp.allclose(f1, r1, atol=1e-6, rtol=1e-6)

    # 2) general forward(t) with non-trivial positions and interpolation_factor
    t2 = jax.random.randint(key, (seq_len,), 0, 1024, dtype=jnp.int32)
    f2, s2 = rotary_embedding_forward(t2, dim, interpolation_factor=2.0)
    r2 = _reference(t2, dim, interpolation_factor=2.0)
    assert s2 == 1.0
    assert jnp.allclose(jax.block_until_ready(f2), r2, atol=1e-5, rtol=1e-6)

    # 3) ragged multi-tile packed path (even grid count for the megacore split)
    seq_len3, dim3 = 2056, 64
    f3, _ = rotary_embedding_forward_from_seq_len(seq_len3, dim3)
    r3 = _reference(jnp.arange(seq_len3, dtype=jnp.int32), dim3)
    assert jnp.allclose(jax.block_until_ready(f3), r3, atol=1e-5, rtol=1e-6)

    # 4) packing fallback (seq_len not a multiple of 128 // dim -> R = 1 layout)
    f4, _ = rotary_embedding_forward_from_seq_len(9, 32)
    r4 = _reference(jnp.arange(9, dtype=jnp.int32), 32)
    assert jnp.allclose(jax.block_until_ready(f4), r4, atol=1e-6, rtol=1e-6)

    print("KERNEL_OK")
</pallas_src>

<mosaic_0001>
module attributes {stable_mosaic.version = 11 : i64} {
  func.func @_rope_iota_kernel(%arg0: i32, %arg1: memref<1x128xf32, #tpu.memory_space<vmem>>, %arg2: memref<1x128xf32, #tpu.memory_space<vmem>>, %arg3: memref<2x128xf32, #tpu.memory_space<vmem>>) attributes {dimension_semantics = [#tpu.dimension_semantics<parallel>], iteration_bounds = array<i64: 1>, scalar_prefetch = 0 : i64, scratch_operands = 0 : i64, tpu.core_type = #tpu.core_type<tc>, window_params = [{pipeline_mode = #tpu.pipeline_mode<synchronous>, transform_indices = @transform_0, window_bounds = array<i64: 1, 128>}, {pipeline_mode = #tpu.pipeline_mode<synchronous>, transform_indices = @transform_1, window_bounds = array<i64: 1, 128>}, {transform_indices = @transform_2, window_bounds = array<i64: 2, 128>}]} {
    %0 = tpu.iota {dimensions = array<i32: 0>} : vector<2x128xi32>
    %c2_i32 = arith.constant 2 : i32
    %1 = arith.muli %arg0, %c2_i32 : i32
    %2 = vector.broadcast %1 : i32 to vector<2x128xi32>
    %3 = arith.addi %2, %0 : vector<2x128xi32>
    %c4_i32 = arith.constant 4 : i32
    %4 = vector.broadcast %c4_i32 : i32 to vector<2x128xi32>
    %5 = arith.muli %3, %4 : vector<2x128xi32>
    %6 = arith.sitofp %5 : vector<2x128xi32> to vector<2x128xf32>
    %c0 = arith.constant 0 : index
    %c0_0 = arith.constant 0 : index
    %7 = vector.load %arg1[%c0, %c0_0] : memref<1x128xf32, #tpu.memory_space<vmem>>, vector<1x128xf32>
    %8 = vector.broadcast %7 : vector<1x128xf32> to vector<2x128xf32>
    %9 = arith.addf %6, %8 : vector<2x128xf32>
    %c0_1 = arith.constant 0 : index
    %c0_2 = arith.constant 0 : index
    %10 = vector.load %arg2[%c0_1, %c0_2] : memref<1x128xf32, #tpu.memory_space<vmem>>, vector<1x128xf32>
    %11 = vector.broadcast %10 : vector<1x128xf32> to vector<2x128xf32>
    %12 = arith.mulf %9, %11 : vector<2x128xf32>
    %c0_3 = arith.constant 0 : index
    %c0_4 = arith.constant 0 : index
    %13 = vector.load %arg3[%c0_3, %c0_4] : memref<2x128xf32, #tpu.memory_space<vmem>>, vector<2x128xf32>
    tpu.vector_store %arg3[%c0_3, %c0_4], %12 {strides = array<i32>} : memref<2x128xf32, #tpu.memory_space<vmem>>, vector<2x128xf32>,
    return
  }
  func.func @transform_0(%arg0: i32) -> (i32, i32) {
    %c0_i32 = arith.constant 0 : i32
    %c0_i32_0 = arith.constant 0 : i32
    %c0_i32_1 = arith.constant 0 : i32
    return %c0_i32, %c0_i32_0 : i32, i32
  }
  func.func @transform_1(%arg0: i32) -> (i32, i32) {
    %c0_i32 = arith.constant 0 : i32
    %c0_i32_0 = arith.constant 0 : i32
    %c0_i32_1 = arith.constant 0 : i32
    return %c0_i32, %c0_i32_0 : i32, i32
  }
  func.func @transform_2(%arg0: i32) -> (i32, i32) {
    %c0_i32 = arith.constant 0 : i32
    %c0_i32_0 = arith.constant 0 : i32
    return %arg0, %c0_i32 : i32, i32
  }
}

</mosaic_0001>

<bundles_post_ra>
// kernel: tpu_custom_call.1
= control target key start
LH: loop header
LB: loop body
LE: loop exit
PB: predicated region body
PF: predicated region fallthrough
CT: control target
= control target key end

     0   :  { %7 = vsyncpa [#allocation3], 0  ;;  %s159_s0 = inlined_call_operand.hbm [shape: f32[1,128], index: 0, kind: input, shape index: {}]   ;;  %s160_s1 = inlined_call_operand.vmem [shape: f32[1,128], index: 1, kind: input, shape index: {}]   ;;  %s161_s2 = inlined_call_operand.hbm [shape: f32[2,128], index: 2, kind: output, shape index: {}]  }
   0x1   :  { %8 = vsyncpa [#allocation4], 0  ;;  %s115_s9 = smov [#allocation2]   ;;  %s67_s13 = scalar_lea.hbm %s159_s0, 16 }
   0x2   :  { %s15_s10 = sshll.u32 %s115_s9, 4  ;;  %p68_p0 = scmp.ne.s32.totalorder %s159_s0, %s67_s13  ;;  %s16_s10 = int_to_ptr.vmem [resolvable:$true] %s15_s10 }
   0x3   :  { %p71_p1 = scmp.lt.u32.totalorder %s67_s13, %s159_s0 }
   0x5   :  { %p73_p2 = pnand %p71_p1, %p68_p0 }
   0x7   :  { %76 = shalt.err (!%p73_p2)
}
   0x8   :  { %s77_s18 = scalar_lea.vmem %s16_s10, 16  ;;  %s81_s19 = scalar_lea.vmem %s16_s10, 32 }
   0x9   :  { %p78_p3 = scmp.ne.s32.totalorder %s16_s10, %s77_s18  ;;  %p82_p4 = scmp.lt.s32.totalorder %s16_s10, %s16_s10 }
   0xa   :  { %p83_p5 = scmp.lt.s32.totalorder %s81_s19, %s77_s18 }
   0xc   :  { %p84_p6 = por %p83_p5, %p82_p4 }
   0xe   :  { %p85_p7 = pnand %p84_p6, %p78_p3 }
  0x10   :  { %88 = shalt.err (!%p85_p7)
}
  0x11   :  { %18 = dma.hbm_to_vmem [thread:$0]  %s159_s0, 16, %s16_s10, [#allocation3]  }
  0x12   :  { %111 = dma.done.wait [#allocation3], 16  }
  0x13   :  { %112 = vsyncadd [#allocation3], 4294967280  ;;  %v24_v0 = vlaneseq  ;;  %v63_v4 = vld [vmem:[#allocation2] ss:$0 sm:$0xff]  ;;  %s116_s24 = smov [#allocation5]  }
  0x14   :  { %v64_v5 = vld [vmem:[%s160_s1] ss:$0 sm:$0xff]  ;;  %s54_s25 = sshll.u32 %s116_s24, 4  ;;  %s55_s25 = int_to_ptr.vmem [resolvable:$true] %s54_s25 }
  0x15   :  { %v25_v1 = vshrl.u32 %v24_v0, 7  ;;  %s89_s26 = scalar_lea.vmem %s55_s25, 32  ;;  %p94_p9 = scmp.lt.s32.totalorder %s55_s25, %s55_s25 }
  0x16   :  { %p90_p8 = scmp.ne.s32.totalorder %s55_s25, %s89_s26  ;;  %p95_p10 = scmp.lt.s32.totalorder %s89_s26, %s89_s26 }
  0x17   :  { %v29_v2 = vmul.u32 4, %v25_v1 }
  0x18   :  { %p96_p11 = por %p95_p10, %p94_p9 }
  0x19   :  { %v30_v3 = vcvt.s32.f32 %v29_v2 }
  0x1a   :  { %p97_p12 = pnand %p96_p11, %p90_p8 }
  0x1b   :  { %v38_v6 = vadd.f32 %v63_v4, %v30_v3 }
  0x1d   :  { %v46_v7 = vmul.f32 %v64_v5, %v38_v6 }
  0x1f   :  { %47 = vst [vmem:[#allocation5] sm:$0x3] %v46_v7 }
  0x20   :  { %100 = shalt.err (!%p97_p12)
}
  0x21   :  { %s101_s28 = scalar_lea.hbm %s161_s2, 32 }
  0x22   :  { %p102_p13 = scmp.ne.s32.totalorder %s161_s2, %s101_s28  ;;  %p105_p0 = scmp.lt.u32.totalorder %s101_s28, %s161_s2 }
  0x24   :  { %p107_p1 = pnand %p105_p0, %p102_p13 }
  0x26   :  { %110 = shalt.err (!%p107_p1)
}
  0x27   :  { %57 = dma.vmem_to_hbm [thread:$0]  %s55_s25, 32, %s161_s2, [#allocation4]  }
  0x28   :  { %113 = dma.done.wait [#allocation4], 32  }
  0x29   :  { %114 = vsyncadd [#allocation4], 4294967264 }
  0x2a   :  { %61 = vsyncpa [#allocation3], 1 }
  0x2b   :  { %62 = vsyncpa [#allocation4], 1 }

</bundles_post_ra>
